<compile_context>
chip_gen: v6e
topology: v6e:2x2x1
jax: 0.10.0
libtpu: 0.0.40
codegen_flags: <defaults>
</compile_context>

<pallas_src>
import functools

import jax
import jax.numpy as jnp
from jax.experimental import pallas as pl
from jax.experimental.pallas import tpu as pltpu


def se_kernel(x_ref, w1t_ref, b1_ref, w2t_ref, b2_ref, a_ref, out_ref, *, inv_hw):
    # x_ref:  (Bt, C, HW)   w1t_ref: (C, hidden)   b1_ref: (1, hidden)
    # w2t_ref:(hidden, C)   b2_ref:  (1, C)        a_ref:  (1,) in SMEM
    #
    # Global average pool over the spatial axis.  Accumulate in f32 (cast is
    # fused into the reduction) -- no full-tile f32 copy is kept live.
    pooled = jnp.sum(x_ref[...], axis=-1, dtype=jnp.float32) * inv_hw      # (Bt, C)

    # fc1 (weights pre-transposed in the wrapper -> no in-kernel transpose).
    h = jnp.dot(pooled, w1t_ref[...],
                preferred_element_type=jnp.float32) + b1_ref[...]          # (Bt, hidden)

    # PReLU with a single shared slope (nn.PReLU() default), read from SMEM.
    # TODO(synk): per-channel PReLU (num_parameters=C) would need a (1, C) slope tile.
    a = a_ref[0]
    h = jnp.where(h > 0, h, a * h)

    # fc2 + sigmoid.
    y = jax.nn.sigmoid(
        jnp.dot(h, w2t_ref[...], preferred_element_type=jnp.float32)
        + b2_ref[...])                                                     # (Bt, C)

    # Channel-wise rescale in the input's native dtype; only the tiny gate is cast.
    gate = y.astype(out_ref.dtype)
    out_ref[...] = x_ref[...] * gate[:, :, None]


def _tpu_budget():
    """Returns (vmem_capacity_bytes, multi_tensorcore) with safe fallbacks."""
    vmem_cap = 128 << 20
    try:
        info = pltpu.get_tpu_info()
        vmem_cap = int(getattr(info, "vmem_capacity_bytes", vmem_cap))
    except Exception:
        pass
    kind = ""
    try:
        kind = jax.devices()[0].device_kind.lower()
    except Exception:
        pass
    # v7x: 2 TensorCores per chip, 64 MiB VMEM per core.
    multi_tc = ("v7" in kind) or (vmem_cap <= (64 << 20))
    return vmem_cap, multi_tc


def _choose_bt(B, per_batch_bytes, target_bytes, multi_tc, vmem_budget):
    """Batch-tile size near the per-generation target, VMEM-safe; prefers an
    even grid count on multi-TensorCore chips so both cores get work."""
    per_batch_bytes = max(per_batch_bytes, 1)
    # 2x double-buffered input tiles + 2x output tiles must fit with slack.
    bt_vmem_max = max(1, (vmem_budget - (2 << 20)) // (4 * per_batch_bytes))
    bt = max(1, min(B, target_bytes // per_batch_bytes, bt_vmem_max))
    if multi_tc and B > 1:
        lo = max(1, bt // 2)
        hi = min(B, 2 * bt, bt_vmem_max)
        best = None
        for cand in range(lo, hi + 1):
            g = -(-B // cand)
            if g % 2 == 0 and (best is None or g < best[0]):
                best = (g, cand)   # fewest steps; smallest bt among equal step counts
        if best is not None:
            bt = best[1]
    return int(bt)


def se_block(x, w1, b1, w2, b2, prelu_a, *, bt=None):
    """SEBlock.forward.  x: (B,C,H,W); w1: (hidden,C); b1: (hidden,);
    w2: (C,hidden); b2: (C,); prelu_a: (1,) shared PReLU slope."""
    B, C, H, W = x.shape
    hidden = w1.shape[0]
    HW = H * W

    x2 = x.reshape(B, C, HW)            # contiguous reshape: no copy, no pad.
    itemsize = jnp.dtype(x.dtype).itemsize
    per_batch_bytes = C * HW * itemsize

    vmem_cap, multi_tc = _tpu_budget()
    vmem_budget = min(vmem_cap // 2, 48 << 20)        # ~32 MiB on v7x, 48 MiB on v5e/v6e
    target_bytes = (4 << 20) if multi_tc else (2 << 20)
    if bt is None:
        bt = _choose_bt(B, per_batch_bytes, target_bytes, multi_tc, vmem_budget)
    bt = max(1, min(int(bt), B))
    grid = pl.cdiv(B, bt)               # partial last tile handled by masked stores
    # TODO(synk): if a single batch element (4*C*HW*itemsize) exceeds the VMEM
    # budget, an inner spatial/channel tiling pass would be required.

    # Pre-transpose params once here so the kernel has zero in-kernel transposes.
    w1t = w1.T                                   # (C, hidden)
    w2t = w2.T                                   # (hidden, C)
    b1r = b1.reshape(1, hidden)
    b2r = b2.reshape(1, C)
    a = prelu_a.reshape(1).astype(jnp.float32)

    tile_bytes = bt * per_batch_bytes
    vmem_limit = int(min(max(4 * tile_bytes + (2 << 20), 16 << 20), vmem_budget))

    kernel = functools.partial(se_kernel, inv_hw=float(1.0 / HW))

    cost = pl.CostEstimate(
        flops=int(2 * B * C * HW + 4 * B * C * hidden),
        transcendentals=int(B * C),
        bytes_accessed=int(2 * B * C * HW * itemsize
                           + 2 * (C * hidden + hidden + C) * 4),
    )

    out = pl.pallas_call(
        kernel,
        out_shape=jax.ShapeDtypeStruct((B, C, HW), x.dtype),
        grid_spec=pltpu.PrefetchScalarGridSpec(
            num_scalar_prefetch=0,
            grid=(grid,),
            in_specs=[
                pl.BlockSpec((bt, C, HW), lambda b: (b, 0, 0)),
                pl.BlockSpec((C, hidden), lambda b: (0, 0)),
                pl.BlockSpec((1, hidden), lambda b: (0, 0)),
                pl.BlockSpec((hidden, C), lambda b: (0, 0)),
                pl.BlockSpec((1, C), lambda b: (0, 0)),
                pl.BlockSpec(memory_space=pltpu.MemorySpace.SMEM),
            ],
            out_specs=pl.BlockSpec((bt, C, HW), lambda b: (b, 0, 0)),
        ),
        compiler_params=pltpu.CompilerParams(
            dimension_semantics=("parallel",),
            vmem_limit_bytes=vmem_limit,
        ),
        cost_estimate=cost,
    )(x2, w1t, b1r, w2t, b2r, a)

    return out.reshape(B, C, H, W)


def se_block_ref(x, w1, b1, w2, b2, prelu_a):
    # Pure-JAX reference of the PyTorch forward.
    y = jnp.mean(x, axis=(2, 3))                 # AdaptiveAvgPool2d(1) -> (B, C)
    y = y @ w1.T + b1                            # Linear(C -> hidden)
    a = prelu_a[0]
    y = jnp.where(y > 0, y, a * y)               # PReLU (shared slope)
    y = jax.nn.sigmoid(y @ w2.T + b2)            # Linear(hidden -> C) + Sigmoid
    return x * y[:, :, None, None]


def _make_inputs(key, B, C, H, W, reduction):
    hidden = max(1, C // reduction)
    kx, kw1, kb1, kw2, kb2 = jax.random.split(key, 5)
    x = jax.random.normal(kx, (B, C, H, W), dtype=jnp.float32)
    w1 = jax.random.normal(kw1, (hidden, C), dtype=jnp.float32) * 0.1
    b1 = jax.random.normal(kb1, (hidden,), dtype=jnp.float32) * 0.1
    w2 = jax.random.normal(kw2, (C, hidden), dtype=jnp.float32) * 0.1
    b2 = jax.random.normal(kb2, (C,), dtype=jnp.float32) * 0.1
    prelu_a = jnp.full((1,), 0.25, dtype=jnp.float32)  # PReLU default init
    return x, w1, b1, w2, b2, prelu_a


if __name__ == "__main__":
    key = jax.random.PRNGKey(0)
    k1, k2 = jax.random.split(key)

    # Test 1: primary shape (auto tile/grid heuristics).
    B, C, H, W = 4, 64, 16, 16
    x, w1, b1, w2, b2, a = _make_inputs(k1, B, C, H, W, reduction=16)
    out = se_block(x, w1, b1, w2, b2, a)
    jax.block_until_ready(out)
    ref = se_block_ref(x, w1, b1, w2, b2, a)
    assert out.shape == (B, C, H, W)
    assert jnp.allclose(out, ref, atol=1e-5, rtol=1e-5)

    # Test 2: non-128-aligned H*W (masked stores) + partial last batch tile
    # (bt=2, B=5 -> cdiv grid of 3 with a masked tail tile).
    B, C, H, W = 5, 64, 12, 12
    x, w1, b1, w2, b2, a = _make_inputs(k2, B, C, H, W, reduction=16)
    out = se_block(x, w1, b1, w2, b2, a, bt=2)
    jax.block_until_ready(out)
    ref = se_block_ref(x, w1, b1, w2, b2, a)
    assert out.shape == (B, C, H, W)
    assert jnp.allclose(out, ref, atol=1e-5, rtol=1e-5)

    print("KERNEL_OK")
</pallas_src>

<mosaic_0001>
module attributes {stable_mosaic.version = 11 : i64} {
  func.func @se_kernel(%arg0: i32, %arg1: memref<4x64x256xf32, #tpu.memory_space<vmem>>, %arg2: memref<64x4xf32, #tpu.memory_space<vmem>>, %arg3: memref<1x4xf32, #tpu.memory_space<vmem>>, %arg4: memref<4x64xf32, #tpu.memory_space<vmem>>, %arg5: memref<1x64xf32, #tpu.memory_space<vmem>>, %arg6: memref<1xf32, #tpu.memory_space<smem>>, %arg7: memref<4x64x256xf32, #tpu.memory_space<vmem>>) attributes {dimension_semantics = [#tpu.dimension_semantics<parallel>], iteration_bounds = array<i64: 1>, scalar_prefetch = 0 : i64, scratch_operands = 0 : i64, tpu.core_type = #tpu.core_type<tc>, window_params = [{transform_indices = @transform_0, window_bounds = array<i64: 4, 64, 256>}, {pipeline_mode = #tpu.pipeline_mode<synchronous>, transform_indices = @transform_1, window_bounds = array<i64: 64, 4>}, {pipeline_mode = #tpu.pipeline_mode<synchronous>, transform_indices = @transform_2, window_bounds = array<i64: 1, 4>}, {pipeline_mode = #tpu.pipeline_mode<synchronous>, transform_indices = @transform_3, window_bounds = array<i64: 4, 64>}, {pipeline_mode = #tpu.pipeline_mode<synchronous>, transform_indices = @transform_4, window_bounds = array<i64: 1, 64>}, {transform_indices = @transform_5, window_bounds = array<i64: 1>}, {transform_indices = @transform_6, window_bounds = array<i64: 4, 64, 256>}]} {
    %c0 = arith.constant 0 : index
    %c0_0 = arith.constant 0 : index
    %c0_1 = arith.constant 0 : index
    %0 = vector.load %arg1[%c0, %c0_0, %c0_1] : memref<4x64x256xf32, #tpu.memory_space<vmem>>, vector<4x64x256xf32>
    %cst = arith.constant dense<0.000000e+00> : vector<4x64xf32>
    %1 = vector.multi_reduction <add>, %0, %cst [2] : vector<4x64x256xf32> to vector<4x64xf32>
    %cst_2 = arith.constant 3.906250e-03 : f32
    %2 = vector.broadcast %cst_2 : f32 to vector<4x64xf32>
    %3 = arith.mulf %1, %2 : vector<4x64xf32>
    %c0_3 = arith.constant 0 : index
    %c0_4 = arith.constant 0 : index
    %4 = vector.load %arg2[%c0_3, %c0_4] : memref<64x4xf32, #tpu.memory_space<vmem>>, vector<64x4xf32>
    %cst_5 = arith.constant dense<0.000000e+00> : vector<4x4xf32>
    %5 = tpu.matmul %3, %4, %cst_5 {dimension_numbers = #tpu.dot_dimension_numbers<[1], [0], [0], [1], [0, 0, 1, 1], [], []>} : vector<4x64xf32>, vector<64x4xf32>, vector<4x4xf32> -> vector<4x4xf32>
    %c0_6 = arith.constant 0 : index
    %c0_7 = arith.constant 0 : index
    %6 = vector.load %arg3[%c0_6, %c0_7] : memref<1x4xf32, #tpu.memory_space<vmem>>, vector<1x4xf32>
    %7 = vector.broadcast %6 : vector<1x4xf32> to vector<4x4xf32>
    %8 = arith.addf %5, %7 : vector<4x4xf32>
    %c0_8 = arith.constant 0 : index
    %9 = memref.load %arg6[%c0_8] : memref<1xf32, #tpu.memory_space<smem>>
    %cst_9 = arith.constant 0.000000e+00 : f32
    %10 = vector.broadcast %cst_9 : f32 to vector<4x4xf32>
    %11 = arith.cmpf ogt, %8, %10 : vector<4x4xf32>
    %12 = vector.broadcast %9 : f32 to vector<4x4xf32>
    %13 = arith.mulf %12, %8 : vector<4x4xf32>
    %14 = arith.select %11, %8, %13 : vector<4x4xi1>, vector<4x4xf32>
    %c0_10 = arith.constant 0 : index
    %c0_11 = arith.constant 0 : index
    %15 = vector.load %arg4[%c0_10, %c0_11] : memref<4x64xf32, #tpu.memory_space<vmem>>, vector<4x64xf32>
    %cst_12 = arith.constant dense<0.000000e+00> : vector<4x64xf32>
    %16 = tpu.matmul %14, %15, %cst_12 {dimension_numbers = #tpu.dot_dimension_numbers<[1], [0], [0], [1], [0, 0, 1, 1], [], []>} : vector<4x4xf32>, vector<4x64xf32>, vector<4x64xf32> -> vector<4x64xf32>
    %c0_13 = arith.constant 0 : index
    %c0_14 = arith.constant 0 : index
    %17 = vector.load %arg5[%c0_13, %c0_14] : memref<1x64xf32, #tpu.memory_space<vmem>>, vector<1x64xf32>
    %18 = vector.broadcast %17 : vector<1x64xf32> to vector<4x64xf32>
    %19 = arith.addf %16, %18 : vector<4x64xf32>
    %20 = arith.negf %19 : vector<4x64xf32>
    %21 = math.exp %20 : vector<4x64xf32>
    %cst_15 = arith.constant 1.000000e+00 : f32
    %22 = vector.broadcast %cst_15 : f32 to vector<4x64xf32>
    %23 = arith.addf %22, %21 : vector<4x64xf32>
    %24 = arith.divf %22, %23 : vector<4x64xf32>
    %c0_16 = arith.constant 0 : index
    %c0_17 = arith.constant 0 : index
    %c0_18 = arith.constant 0 : index
    %25 = vector.load %arg1[%c0_16, %c0_17, %c0_18] : memref<4x64x256xf32, #tpu.memory_space<vmem>>, vector<4x64x256xf32>
    %26 = vector.shape_cast %24 : vector<4x64xf32> to vector<4x64x1xf32>
    %27 = vector.broadcast %26 : vector<4x64x1xf32> to vector<4x64x256xf32>
    %28 = arith.mulf %25, %27 : vector<4x64x256xf32>
    %c0_19 = arith.constant 0 : index
    %c0_20 = arith.constant 0 : index
    %c0_21 = arith.constant 0 : index
    %29 = vector.load %arg7[%c0_19, %c0_20, %c0_21] : memref<4x64x256xf32, #tpu.memory_space<vmem>>, vector<4x64x256xf32>
    tpu.vector_store %arg7[%c0_19, %c0_20, %c0_21], %28 {strides = array<i32>} : memref<4x64x256xf32, #tpu.memory_space<vmem>>, vector<4x64x256xf32>,
    return
  }
  func.func @transform_0(%arg0: i32) -> (i32, i32, i32) {
    %c0_i32 = arith.constant 0 : i32
    %c0_i32_0 = arith.constant 0 : i32
    %c0_i32_1 = arith.constant 0 : i32
    return %arg0, %c0_i32, %c0_i32_0 : i32, i32, i32
  }
  func.func @transform_1(%arg0: i32) -> (i32, i32) {
    %c0_i32 = arith.constant 0 : i32
    %c0_i32_0 = arith.constant 0 : i32
    %c0_i32_1 = arith.constant 0 : i32
    return %c0_i32, %c0_i32_0 : i32, i32
  }
  func.func @transform_2(%arg0: i32) -> (i32, i32) {
    %c0_i32 = arith.constant 0 : i32
    %c0_i32_0 = arith.constant 0 : i32
    %c0_i32_1 = arith.constant 0 : i32
    return %c0_i32, %c0_i32_0 : i32, i32
  }
  func.func @transform_3(%arg0: i32) -> (i32, i32) {
    %c0_i32 = arith.constant 0 : i32
    %c0_i32_0 = arith.constant 0 : i32
    %c0_i32_1 = arith.constant 0 : i32
    return %c0_i32, %c0_i32_0 : i32, i32
  }
  func.func @transform_4(%arg0: i32) -> (i32, i32) {
    %c0_i32 = arith.constant 0 : i32
    %c0_i32_0 = arith.constant 0 : i32
    %c0_i32_1 = arith.constant 0 : i32
    return %c0_i32, %c0_i32_0 : i32, i32
  }
  func.func @transform_5(%arg0: i32) -> i32 {
    %c0_i32 = arith.constant 0 : i32
    %c0_i32_0 = arith.constant 0 : i32
    return %c0_i32 : i32
  }
  func.func @transform_6(%arg0: i32) -> (i32, i32, i32) {
    %c0_i32 = arith.constant 0 : i32
    %c0_i32_0 = arith.constant 0 : i32
    %c0_i32_1 = arith.constant 0 : i32
    return %arg0, %c0_i32, %c0_i32_0 : i32, i32, i32
  }
}

</mosaic_0001>

<bundles_post_ra>
// kernel: tpu_custom_call.1
= control target key start
LH: loop header
LB: loop body
LE: loop exit
PB: predicated region body
PF: predicated region fallthrough
CT: control target
= control target key end

     0   :  { %12 = vsyncpa [#allocation4], 0  ;;  %s1461_s0 = inlined_call_operand.hbm [shape: f32[4,64,256], index: 0, kind: input, shape index: {}]   ;;  %s1462_s1 = inlined_call_operand.vmem [shape: f32[64,4], index: 1, kind: input, shape index: {}]   ;;  %s1463_s2 = inlined_call_operand.vmem [shape: f32[1,4], index: 2, kind: input, shape index: {}]   ;;  %s1464_s3 = inlined_call_operand.vmem [shape: f32[4,64], index: 3, kind: input, shape index: {}]   ;;  %s1465_s4 = inlined_call_operand.vmem [shape: f32[1,64], index: 4, kind: input, shape index: {}]   ;;  %s1466_s5 = inlined_call_operand.<no memory space> [shape: f32[1], index: 5, kind: input, shape index: {}]   ;;  %s1467_s6 = inlined_call_operand.hbm [shape: f32[4,64,256], index: 6, kind: output, shape index: {}]  }
   0x1   :  { %13 = vsyncpa [#allocation5], 0  ;;  %s1006_s21 = smov [#allocation3]  }
   0x2   :  { %s19_s22 = sshll.u32 %s1006_s21, 4  ;;  %s20_s22 = int_to_ptr.vmem [resolvable:$true] %s19_s22 }
   0x3   :  { %s970_s23 = scalar_lea.vmem %s20_s22, 8192  ;;  %p975_p1 = scmp.lt.s32.totalorder %s20_s22, %s20_s22 }
   0x4   :  { %p971_p0 = scmp.ne.s32.totalorder %s20_s22, %s970_s23  ;;  %p976_p2 = scmp.lt.s32.totalorder %s970_s23, %s970_s23 }
   0x6   :  { %p977_p3 = por %p976_p2, %p975_p1 }
   0x8   :  { %p978_p4 = pnand %p977_p3, %p971_p0 }
   0xa   :  { %981 = shalt.err (!%p978_p4)
}
   0xb   :  { %s1007_s24 = smov 256   ;;  %s1008_s25 = smov 16  }
   0xc   :  { %25 = dma.hbm_to_vmem [thread:$0]  %s1461_s0, 8192, %s20_s22, [#allocation4], %s1007_s24, %s1007_s24, %s1008_s25  }
   0xd   :  { %1002 = dma.done.wait [#allocation4], 8192  }
   0xe   :  { %1003 = vsyncadd [#allocation4], 4294959104  ;;  %v1053_v0 = vld [vmem:[#allocation3 + $0x80] sm:$0xff]  ;;  %v1055_v1 = vld [vmem:[#allocation3 + $0x88] sm:$0xff]  ;;  %vm1010_vm0 = vmmov 0   ;;  %vm289_vm1 = vcmask 130112  }
   0xf   :  { %v1057_v2 = vld [vmem:[#allocation3] sm:$0xff]  ;;  %v127_v3 = vadd.f32 %v1055_v1, %v1053_v0  ;;  %v1061_v4 = vld [vmem:[#allocation3 + $0x8] sm:$0xff]  ;;  %v1063_v5 = vld [vmem:[#allocation3 + $0x90] sm:$0xff]  ;;  %vm296_vm2 = vcmask 195712   ;;  %vm303_vm3 = vcmask 261312   ;;  %vm310_vm4 = vcmask 326912  }
  0x10   :  { %1513 = vst [vmem:[#allocation9_spill] sm:$0xff] %v1063_v5  ;;  %v1065_v6 = vld [vmem:[#allocation3 + $0x98] sm:$0xff]  ;;  %v103_v7 = vadd.f32 %v1061_v4, %v1057_v2  ;;  %v1069_v8 = vld [vmem:[#allocation3 + $0x10] sm:$0xff]  ;;  %v1077_v12 = vld [vmem:[#allocation3 + $0xa0] sm:$0xff]  ;;  %vm317_vm5 = vcmask 392512   ;;  %vm324_vm6 = vcmask 458112  }
  0x11   :  { %1514 = vst [vmem:[#allocation10_spill] sm:$0xff] %v1065_v6  ;;  %v1071_v9 = vld [vmem:[#allocation3 + $0x18] sm:$0xff]  ;;  %128 = vadd.xlane.f32.xlu1 %v127_v3  ;;  %v130_v10 = vadd.f32 %v1065_v6, %v1063_v5  ;;  %v1079_v13 = vld [vmem:[#allocation3 + $0xa8] sm:$0xff]  ;;  %v1081_v14 = vld [vmem:[#allocation3 + $0x20] sm:$0xff]  ;;  %vm331_vm7 = vcmask 523712   ;;  %vm450_vm8 = vcmask 1041409  }
  0x12   :  { %104 = vadd.xlane.f32.xlu0 %v103_v7  ;;  %v106_v11 = vadd.f32 %v1071_v9, %v1069_v8  ;;  %1515 = vst [vmem:[#allocation11_spill] sm:$0xff] %v1079_v13  ;;  %v1083_v15 = vld [vmem:[#allocation3 + $0x28] sm:$0xff]  ;;  %v133_v16 = vadd.f32 %v1079_v13, %v1077_v12  ;;  %v1089_v18 = vld [vmem:[#allocation3 + $0x110] sm:$0xff]  ;;  %v1091_v19 = vld [vmem:[#allocation3 + $0x118] sm:$0xff]  ;;  %vm452_vm9 = vcmask 1042434   ;;  %vm454_vm10 = vcmask 1043459  }
  0x13   :  { %v109_v17 = vadd.f32 %v1083_v15, %v1081_v14  ;;  %1516 = vst [vmem:[#allocation12_spill] sm:$0xff] %v1089_v18  ;;  %1517 = vst [vmem:[#allocation13_spill] sm:$0xff] %v1091_v19  ;;  %v1093_v20 = vld [vmem:[#allocation3 + $0x100] sm:$0xff]  ;;  %v1095_v21 = vld [vmem:[#allocation3 + $0x108] sm:$0xff]  ;;  %v154_v22 = vadd.f32 %v1091_v19, %v1089_v18  ;;  %vm456_vm11 = vcmask 523264   ;;  %vm546_vm12 = vcmask 1043456  }
  0x14   :  { %1518 = vst [vmem:[#allocation14_spill] sm:$0xff] %v1093_v20  ;;  %1519 = vst [vmem:[#allocation15_spill] sm:$0xff] %v1095_v21  ;;  %v151_v23 = vadd.f32 %v1095_v21, %v1093_v20  ;;  %v1101_v24 = vld [vmem:[#allocation3 + $0xb0] sm:$0xff]  ;;  %v1103_v25 = vld [vmem:[#allocation3 + $0xb8] sm:$0xff]  ;;  %vm542_vm14 = vcmask 31744  }
  0x15   :  { %131 = vadd.xlane.f32.xlu1 %v130_v10  ;;  %1520 = vst [vmem:[#allocation16_spill] sm:$0xff] %v1101_v24  ;;  %1521 = vst [vmem:[#allocation17_spill] sm:$0xff] %v1103_v25  ;;  %v1105_v26 = vld [vmem:[#allocation3 + $0x30] sm:$0xff]  ;;  %v1107_v27 = vld [vmem:[#allocation3 + $0x38] sm:$0xff]  ;;  %v136_v28 = vadd.f32 %v1103_v25, %v1101_v24 }
  0x16   :  { %107 = vadd.xlane.f32.xlu0 %v106_v11  ;;  %v112_v29 = vadd.f32 %v1107_v27, %v1105_v26  ;;  %v1113_v30 = vld [vmem:[#allocation3 + $0x180] sm:$0xff]  ;;  %v1115_v31 = vld [vmem:[#allocation3 + $0x188] sm:$0xff]  ;;  %v1129_v38 = vld [vmem:[#allocation3 + $0x190] sm:$0xff] }
  0x17   :  { %1522 = vst [vmem:[#allocation18_spill] sm:$0xff] %v1113_v30  ;;  %1523 = vst [vmem:[#allocation19_spill] sm:$0xff] %v1115_v31  ;;  %v1117_v32 = vld [vmem:[#allocation3 + $0x120] sm:$0xff]  ;;  %v1119_v33 = vld [vmem:[#allocation3 + $0x128] sm:$0xff]  ;;  %v175_v34 = vadd.f32 %v1115_v31, %v1113_v30  ;;  %v278_v30 = vlaneseq }
  0x18   :  { %1524 = vst [vmem:[#allocation20_spill] sm:$0xff] %v1117_v32  ;;  %1525 = vst [vmem:[#allocation21_spill] sm:$0xff] %v1119_v33  ;;  %v157_v35 = vadd.f32 %v1119_v33, %v1117_v32  ;;  %v1125_v36 = vld [vmem:[#allocation3 + $0x40] sm:$0xff]  ;;  %v1127_v37 = vld [vmem:[#allocation3 + $0x48] sm:$0xff] }
  0x19   :  { %134 = vadd.xlane.f32.xlu1 %v133_v16  ;;  %1526 = vst [vmem:[#allocation22_spill] sm:$0xff] %v1129_v38  ;;  %v1131_v39 = vld [vmem:[#allocation3 + $0x198] sm:$0xff]  ;;  %v115_v40 = vadd.f32 %v1127_v37, %v1125_v36  ;;  %v1137_v42 = vld [vmem:[#allocation3 + $0x130] sm:$0xff]  ;;  %v1141_v44 = vld [vmem:[#allocation3 + $0xc0] sm:$0xff] }
  0x1a   :  { %110 = vadd.xlane.f32.xlu0 %v109_v17  ;;  %1527 = vst [vmem:[#allocation23_spill] sm:$0xff] %v1131_v39  ;;  %v178_v41 = vadd.f32 %v1131_v39, %v1129_v38  ;;  %1528 = vst [vmem:[#allocation24_spill] sm:$0xff] %v1137_v42  ;;  %v1139_v43 = vld [vmem:[#allocation3 + $0x138] sm:$0xff]  ;;  %v1143_v45 = vld [vmem:[#allocation3 + $0xc8] sm:$0xff] }
  0x1b   :  { %1529 = vst [vmem:[#allocation25_spill] sm:$0xff] %v1139_v43  ;;  %1530 = vst [vmem:[#allocation26_spill] sm:$0xff] %v1141_v44  ;;  %v160_v46 = vadd.f32 %v1139_v43, %v1137_v42  ;;  %v139_v47 = vadd.f32 %v1143_v45, %v1141_v44  ;;  %v1149_v48 = vld [vmem:[#allocation3 + $0x50] sm:$0xff]  ;;  %v1151_v49 = vld [vmem:[#allocation3 + $0x58] sm:$0xff] }
  0x1c   :  { %1531 = vst [vmem:[#allocation27_spill] sm:$0xff] %v1143_v45  ;;  %v1153_v50 = vld [vmem:[#allocation3 + $0x1a0] sm:$0xff]  ;;  %v1155_v51 = vld [vmem:[#allocation3 + $0x1a8] sm:$0xff]  ;;  %v118_v52 = vadd.f32 %v1151_v49, %v1149_v48  ;;  %v1165_v56 = vld [vmem:[#allocation3 + $0xd0] sm:$0xff] }
  0x1d   :  { %155 = vadd.xlane.f32.xlu1 %v154_v22  ;;  %1532 = vst [vmem:[#allocation28_spill] sm:$0xff] %v1153_v50  ;;  %1533 = vst [vmem:[#allocation29_spill] sm:$0xff] %v1155_v51  ;;  %v181_v53 = vadd.f32 %v1155_v51, %v1153_v50  ;;  %v1161_v54 = vld [vmem:[#allocation3 + $0x140] sm:$0xff]  ;;  %v1163_v55 = vld [vmem:[#allocation3 + $0x148] sm:$0xff] }
  0x1e   :  { %152 = vadd.xlane.f32.xlu0 %v151_v23  ;;  %1534 = vst [vmem:[#allocation30_spill] sm:$0xff] %v1161_v54  ;;  %1535 = vst [vmem:[#allocation31_spill] sm:$0xff] %v1163_v55  ;;  %v1167_v57 = vld [vmem:[#allocation3 + $0xd8] sm:$0xff]  ;;  %v163_v58 = vadd.f32 %v1163_v55, %v1161_v54  ;;  %v1173_v60 = vld [vmem:[#allocation3 + $0x60] sm:$0xff] }
  0x1f   :  { %1536 = vst [vmem:[#allocation32_spill] sm:$0xff] %v1165_v56  ;;  %1537 = vst [vmem:[#allocation33_spill] sm:$0xff] %v1167_v57  ;;  %v142_v59 = vadd.f32 %v1167_v57, %v1165_v56  ;;  %v1175_v61 = vld [vmem:[#allocation3 + $0x68] sm:$0xff]  ;;  %v1177_v62 = vld [vmem:[#allocation3 + $0x1b0] sm:$0xff] }
  0x20   :  { %1538 = vst [vmem:[#allocation34_spill] sm:$0xff] %v1177_v62  ;;  %v1179_v63 = vld [vmem:[#allocation3 + $0x1b8] sm:$0xff]  ;;  %v121_v3 = vadd.f32 %v1175_v61, %v1173_v60  ;;  %v1185_v10 = vld [vmem:[#allocation3 + $0x150] sm:$0xff]  ;;  %v1189_v16 = vld [vmem:[#allocation3 + $0xe0] sm:$0xff] }
  0x21   :  { %137 = vadd.xlane.f32.xlu1 %v136_v28  ;;  %1539 = vst [vmem:[#allocation35_spill] sm:$0xff] %v1179_v63  ;;  %v184_v7 = vadd.f32 %v1179_v63, %v1177_v62  ;;  %1540 = vst [vmem:[#allocation36_spill] sm:$0xff] %v1185_v10  ;;  %v1187_v11 = vld [vmem:[#allocation3 + $0x158] sm:$0xff]  ;;  %v1191_v17 = vld [vmem:[#allocation3 + $0xe8] sm:$0xff] }
  0x22   :  { %113 = vadd.xlane.f32.xlu0 %v112_v29  ;;  %1541 = vst [vmem:[#allocation37_spill] sm:$0xff] %v1187_v11  ;;  %1542 = vst [vmem:[#allocation38_spill] sm:$0xff] %v1189_v16  ;;  %v166_v22 = vadd.f32 %v1187_v11, %v1185_v10  ;;  %v145_v23 = vadd.f32 %v1191_v17, %v1189_v16  ;;  %v1197_v28 = vld [vmem:[#allocation3 + $0x70] sm:$0xff]  ;;  %v1199_v29 = vld [vmem:[#allocation3 + $0x78] sm:$0xff] }
  0x23   :  { %1543 = vst [vmem:[#allocation39_spill] sm:$0xff] %v1191_v17  ;;  %v1235_v62 = vld [vmem:[#allocation3 + $0x1f8] sm:$0xff] }
  0x24   :  { %1555 = vst [vmem:[#allocation51_spill] sm:$0xff] %v1235_v62 }
  0x25   :  { %176 = vadd.xlane.f32.xlu1 %v175_v34  ;;  %v1201_v34 = vld [vmem:[#allocation3 + $0x1c0] sm:$0xff] }
  0x26   :  { %158 = vadd.xlane.f32.xlu0 %v157_v35  ;;  %1544 = vst [vmem:[#allocation40_spill] sm:$0xff] %v1201_v34  ;;  %v1203_v35 = vld [vmem:[#allocation3 + $0x1c8] sm:$0xff] }
  0x27   :  { %1545 = vst [vmem:[#allocation41_spill] sm:$0xff] %v1203_v35 }
  0x29   :  { %116 = vadd.xlane.f32.xlu1 %v115_v40  ;;  %v124_v40 = vadd.f32 %v1199_v29, %v1197_v28 }
  0x2a   :  { %179 = vadd.xlane.f32.xlu0 %v178_v41  ;;  %v187_v41 = vadd.f32 %v1203_v35, %v1201_v34  ;;  %v1237_v35 = vld [vmem:[#allocation3 + $0x1e0] sm:$0xff]  ;;  %v1239_v34 = vld [vmem:[#allocation3 + $0x1e8] sm:$0xff] }
  0x2b   :  { %1556 = vst [vmem:[#allocation52_spill] sm:$0xff] %v1237_v35  ;;  %1557 = vst [vmem:[#allocation53_spill] sm:$0xff] %v1239_v34 }
  0x2d   :  { %161 = vadd.xlane.f32.xlu1 %v160_v46  ;;  %v1209_v46 = vld [vmem:[#allocation3 + $0x160] sm:$0xff] }
  0x2e   :  { %140 = vadd.xlane.f32.xlu0 %v139_v47  ;;  %1546 = vst [vmem:[#allocation42_spill] sm:$0xff] %v1209_v46  ;;  %v1211_v47 = vld [vmem:[#allocation3 + $0x168] sm:$0xff] }
  0x2f   :  { %1547 = vst [vmem:[#allocation43_spill] sm:$0xff] %v1211_v47 }
  0x31   :  { %119 = vadd.xlane.f32.xlu1 %v118_v52  ;;  %v1213_v52 = vld [vmem:[#allocation3 + $0xf0] sm:$0xff] }
  0x32   :  { %182 = vadd.xlane.f32.xlu0 %v181_v53  ;;  %1548 = vst [vmem:[#allocation44_spill] sm:$0xff] %v1213_v52  ;;  %v1215_v53 = vld [vmem:[#allocation3 + $0xf8] sm:$0xff] }
  0x33   :  { %1549 = vst [vmem:[#allocation45_spill] sm:$0xff] %v1215_v53 }
  0x35   :  { %164 = vadd.xlane.f32.xlu1 %v163_v58  ;;  %v169_v58 = vadd.f32 %v1211_v47, %v1209_v46  ;;  %v1273_v47 = vshrl.u32 %v278_v30, 7 }
  0x36   :  { %143 = vadd.xlane.f32.xlu0 %v142_v59  ;;  %v148_v59 = vadd.f32 %v1215_v53, %v1213_v52 }
  0x39   :  { %122 = vadd.xlane.f32.xlu1 %v121_v3  ;;  %v1221_v3 = vld [vmem:[#allocation3 + $0x170] sm:$0xff] }
  0x3a   :  { %185 = vadd.xlane.f32.xlu0 %v184_v7  ;;  %1550 = vst [vmem:[#allocation46_spill] sm:$0xff] %v1221_v3  ;;  %v1223_v7 = vld [vmem:[#allocation3 + $0x178] sm:$0xff] }
  0x3b   :  { %1551 = vst [vmem:[#allocation47_spill] sm:$0xff] %v1223_v7  ;;  %v172_v63 = vadd.f32 %v1223_v7, %v1221_v3 }
  0x3d   :  { %167 = vadd.xlane.f32.xlu1 %v166_v22  ;;  %v1225_v22 = vld [vmem:[#allocation3 + $0x1d0] sm:$0xff] }
  0x3e   :  { %146 = vadd.xlane.f32.xlu0 %v145_v23  ;;  %1552 = vst [vmem:[#allocation48_spill] sm:$0xff] %v1225_v22  ;;  %v1227_v23 = vld [vmem:[#allocation3 + $0x1d8] sm:$0xff] }
  0x3f   :  { %1553 = vst [vmem:[#allocation49_spill] sm:$0xff] %v1227_v23 }
  0x41   :  { %125 = vadd.xlane.f32.xlu1 %v124_v40  ;;  %v190_v40 = vadd.f32 %v1227_v23, %v1225_v22  ;;  %v238_v23 = vld [vmem:[%s1462_s1 + $0x38] sm:$0xff] }
  0x42   :  { %188 = vadd.xlane.f32.xlu0 %v187_v41  ;;  %v1233_v41 = vld [vmem:[#allocation3 + $0x1f0] sm:$0xff] }
  0x43   :  { %1554 = vst [vmem:[#allocation50_spill] sm:$0xff] %v1233_v41  ;;  %v196_v39 = vadd.f32 %v1235_v62, %v1233_v41 }
  0x45   :  { %170 = vadd.xlane.f32.xlu1 %v169_v58  ;;  %v193_v58 = vadd.f32 %v1239_v34, %v1237_v35 }
  0x46   :  { %149 = vadd.xlane.f32.xlu0 %v148_v59  ;;  %v1009_v59 = vmov 0.0  }
  0x47   :  { %928 = vmatprep.subr.mxu0 %v1009_v59  ;;  %947 = vmatprep.subr.mxu1 %v1009_v59 }
  0x48   :  { %929 = vmatpush3.msra.mxu0 %v238_v23  ;;  %v234_v23 = vld [vmem:[%s1462_s1 + $0x18] sm:$0xff]  ;;  %944 = vmatprep.mubr.msk.f32.mxu0 %vm1010_vm0, %v1009_v59 }
  0x49   :  { %173 = vadd.xlane.f32.xlu1 %v172_v63  ;;  %930 = vmatprep.subr.mxu0 %v1009_v59  ;;  %v237_v63 = vld [vmem:[%s1462_s1 + $0x30] sm:$0xff] }
  0x4a   :  { %191 = vadd.xlane.f32.xlu0 %v190_v40  ;;  %931 = vmatpush3.msra.mxu0 %v237_v63  ;;  %v235_v40 = vld [vmem:[%s1462_s1 + $0x20] sm:$0xff]  ;;  %v232_v63 = vld [vmem:[%s1462_s1 + $0x8] sm:$0xff] }
  0x4b   :  { %932 = vmatprep.subr.mxu0 %v1009_v59  ;;  %949 = vmatprep.mubr.msk.f32.mxu1 %vm1010_vm0, %v1009_v59 }
  0x4d   :  { %197 = vadd.xlane.f32.xlu1 %v196_v39  ;;  %v236_v39 = vld [vmem:[%s1462_s1 + $0x28] sm:$0xff] }
  0x4e   :  { %194 = vadd.xlane.f32.xlu0 %v193_v58  ;;  %933 = vmatpush3.msra.mxu0 %v236_v39  ;;  %v233_v58 = vld [vmem:[%s1462_s1 + $0x10] sm:$0xff]  ;;  %v231_v39 = vld [vmem:[%s1462_s1] sm:$0xff] }
  0x4f   :  { %934 = vmatprep.subr.mxu0 %v1009_v59 }
  0x50   :  { %935 = vmatpush3.msra.mxu0 %v235_v40 }
  0x51   :  { %936 = vmatprep.subr.mxu0 %v1009_v59 }
  0x52   :  { %937 = vmatpush3.msra.mxu0 %v234_v23 }
  0x53   :  { %938 = vmatprep.subr.mxu0 %v1009_v59 }
  0x54   :  { %939 = vmatpush3.msra.mxu0 %v233_v58 }
  0x55   :  { %940 = vmatprep.subr.mxu0 %v1009_v59 }
  0x56   :  { %941 = vmatpush3.msra.mxu0 %v232_v63 }
  0x57   :  { %942 = vmatprep.subr.mxu0 %v1009_v59  ;;  %v279_v59 = vand.u32 127, %v278_v30 }
  0x58   :  { %943 = vmatpush3.msra.mxu0 %v231_v39 }
  0x59   :  { %v284_v46 = vadd.s32 4294967288, %v279_v59  ;;  %v291_v43 = vadd.s32 4294967280, %v279_v59  ;;  %v298_v55 = vadd.s32 4294967272, %v279_v59  ;;  %v305_v54 = vadd.s32 4294967264, %v279_v59 }
  0x5a   :  { %v1280_v18 = vsub.s32 %v279_v59, %v1273_v47  ;;  %v312_v30 = vadd.s32 4294967256, %v279_v59  ;;  %v319_v53 = vadd.s32 4294967248, %v279_v59 }
  0x5b   :  { %v1283_v33 = vsub.s32 %v284_v46, %v1273_v47  ;;  %v1286_v32 = vsub.s32 %v291_v43, %v1273_v47  ;;  %v1291_v20 = vsub.s32 %v298_v55, %v1273_v47  ;;  %v1294_v57 = vsub.s32 %v305_v54, %v1273_v47 }
  0x5c   :  { %v1302_v55 = vsub.s32 %v319_v53, %v1273_v47 }
  0x9a   :  { %v129_v40 = vpop.xlane.xlu1 %128 }
  0x9b   :  { %v105_v23 = vpop.xlane.xlu0 %104  ;;  %v207_v46 = vmul.f32 0.00390625, %v129_v40 }
  0x9c   :  { %v199_v44 = vmul.f32 0.00390625, %v105_v23 }
  0x9e   :  { %v132_v62 = vpop.xlane.xlu1 %131 }
  0x9f   :  { %v108_v41 = vpop.xlane.xlu0 %107  ;;  %v208_v21 = vmul.f32 0.00390625, %v132_v62  ;;  %v1299_v62 = vsub.s32 %v312_v30, %v1273_v47 }
  0xa0   :  { %v200_v17 = vmul.f32 0.00390625, %v108_v41 }
  0xa1   :  { %v340_v5 = vrot.slane %v208_v21, %v1283_v33  ;;  %v283_v21 = vrot.slane %v199_v44, %v1280_v18 }
  0xa2   :  { %v135_v58 = vpop.xlane.xlu1 %134 }
  0xa3   :  { %v111_v22 = vpop.xlane.xlu0 %110  ;;  %v209_v16 = vmul.f32 0.00390625, %v135_v58  ;;  %v326_v58 = vadd.s32 4294967240, %v279_v59 }
  0xa4   :  { %v201_v43 = vmul.f32 0.00390625, %v111_v22  ;;  %v336_v22 = vrot.slane %v207_v46, %v1280_v18 }
  0xa6   :  { %v156_v34 = vpop.xlane.xlu1 %155 }
  0xa7   :  { %v153_v35 = vpop.xlane.xlu0 %152  ;;  %v216_v25 = vmul.f32 0.00390625, %v156_v34  ;;  %v288_v34 = vrot.slane %v200_v17, %v1283_v33  ;;  %v341_v17 = vsel %vm289_vm1, %v340_v5, %v336_v22 }
  0xa8   :  { %v215_v24 = vmul.f32 0.00390625, %v153_v35  ;;  %v295_v35 = vrot.slane %v201_v43, %v1286_v32 }
  0xa9   :  { %v379_v23 = vrot.slane %v216_v25, %v1283_v33 }
  0xaa   :  { %v138_v38 = vpop.xlane.xlu1 %137  ;;  %v375_v53 = vrot.slane %v215_v24, %v1280_v18  ;;  %v290_v24 = vsel %vm289_vm1, %v288_v34, %v283_v21 }
  0xab   :  { %v114_v51 = vpop.xlane.xlu0 %113  ;;  %v210_v45 = vmul.f32 0.00390625, %v138_v38  ;;  %v345_v38 = vrot.slane %v209_v16, %v1286_v32 }
  0xac   :  { %v202_v6 = vmul.f32 0.00390625, %v114_v51 }
  0xad   :  { %v350_v30 = vrot.slane %v210_v45, %v1291_v20  ;;  %v346_v45 = vsel %vm296_vm2, %v345_v38, %v341_v17 }
  0xae   :  { %v177_v63 = vpop.xlane.xlu1 %176 }
  0xaf   :  { %v159_v50 = vpop.xlane.xlu0 %158  ;;  %v351_v5 = vsel %vm303_vm3, %v350_v30, %v346_v45 }
  0xb0   :  { %v217_v13 = vmul.f32 0.00390625, %v159_v50  ;;  %v302_v50 = vrot.slane %v202_v6, %v1291_v20  ;;  %v1321_v6 = vsub.s32 %v326_v58, %v1273_v47 }
  0xb2   :  { %v117_v7 = vpop.xlane.xlu1 %116  ;;  %v384_v16 = vrot.slane %v217_v13, %v1286_v32 }
  0xb3   :  { %v180_v3 = vpop.xlane.xlu0 %179  ;;  %v203_v40 = vmul.f32 0.00390625, %v117_v7  ;;  %v223_v7 = vmul.f32 0.00390625, %v177_v63  ;;  %v380_v63 = vsel %vm289_vm1, %v379_v23, %v375_v53 }
  0xb4   :  { %v224_v51 = vmul.f32 0.00390625, %v180_v3  ;;  %v385_v58 = vsel %vm296_vm2, %v384_v16, %v380_v63 }
  0xb5   :  { %v309_v3 = vrot.slane %v203_v40, %v1294_v57  ;;  %v414_v40 = vrot.slane %v223_v7, %v1280_v18 }
  0xb6   :  { %v162_v31 = vpop.xlane.xlu1 %161  ;;  %v418_v44 = vrot.slane %v224_v51, %v1283_v33 }
  0xb7   :  { %v141_v11 = vpop.xlane.xlu0 %140  ;;  %v218_v59 = vmul.f32 0.00390625, %v162_v31  ;;  %v297_v31 = vsel %vm296_vm2, %v295_v35, %v290_v24 }
  0xb8   :  { %v211_v43 = vmul.f32 0.00390625, %v141_v11  ;;  %v304_v11 = vsel %vm303_vm3, %v302_v50, %v297_v31 }
  0xb9   :  { %v389_v22 = vrot.slane %v218_v59, %v1291_v20  ;;  %v311_v38 = vsel %vm310_vm4, %v309_v3, %v304_v11 }
  0xba   :  { %v1269_v10 = vpop.xlane.xlu1 %119  ;;  %v355_v51 = vrot.slane %v211_v43, %v1294_v57 }
  0xbb   :  { %v1271_v39 = vpop.xlane.xlu0 %182  ;;  %v204_v13 = vmul.f32 0.00390625, %v1269_v10  ;;  %v419_v10 = vsel %vm289_vm1, %v418_v44, %v414_v40  ;;  %v390_v59 = vsel %vm303_vm3, %v389_v22, %v385_v58 }
  0xbc   :  { %v225_v53 = vmul.f32 0.00390625, %v1271_v39  ;;  %v356_v39 = vsel %vm310_vm4, %v355_v51, %v351_v5 }
  0xbe   :  { %v1275_v42 = vpop.xlane.xlu1 %164 }
  0xbf   :  { %v1277_v19 = vpop.xlane.xlu0 %143  ;;  %v219_v34 = vmul.f32 0.00390625, %v1275_v42  ;;  %v316_v42 = vrot.slane %v204_v13, %v1299_v62 }
  0xc0   :  { %v212_v35 = vmul.f32 0.00390625, %v1277_v19 }
  0xc1   :  { %v394_v19 = vrot.slane %v219_v34, %v1294_v57  ;;  %v318_v63 = vsel %vm317_vm5, %v316_v42, %v311_v38 }
  0xc2   :  { %v1288_v52 = vpop.xlane.xlu1 %122 }
  0xc3   :  { %v1296_v56 = vpop.xlane.xlu0 %185  ;;  %v205_v17 = vmul.f32 0.00390625, %v1288_v52  ;;  %v395_v13 = vsel %vm310_vm4, %v394_v19, %v390_v59 }
  0xc4   :  { %v226_v21 = vmul.f32 0.00390625, %v1296_v56  ;;  %v423_v56 = vrot.slane %v225_v53, %v1286_v32 }
  0xc6   :  { %v168_v54 = vpop.xlane.xlu1 %167  ;;  %v428_v52 = vrot.slane %v226_v21, %v1291_v20  ;;  %v424_v38 = vsel %vm296_vm2, %v423_v56, %v419_v10 }
  0xc7   :  { %v147_v41 = vpop.xlane.xlu0 %146  ;;  %v220_v18 = vmul.f32 0.00390625, %v168_v54  ;;  %v360_v54 = vrot.slane %v212_v35, %v1299_v62 }
  0xc8   :  { %v213_v30 = vmul.f32 0.00390625, %v147_v41 }
  0xc9   :  { %v399_v45 = vrot.slane %v220_v18, %v1299_v62  ;;  %v361_v22 = vsel %vm317_vm5, %v360_v54, %v356_v39  ;;  %v531_v54 = vstv %s1466_s5 }
  0xca   :  { %v126_v46 = vpop.xlane.xlu1 %125  ;;  %v365_v44 = vrot.slane %v213_v30, %v1302_v55 }
  0xcb   :  { %v189_v25 = vpop.xlane.xlu0 %188  ;;  %v206_v41 = vmul.f32 0.00390625, %v126_v46  ;;  %v323_v46 = vrot.slane %v205_v17, %v1302_v55  ;;  %v400_v51 = vsel %vm317_vm5, %v399_v45, %v395_v13  ;;  %v913_v45 = vld [vmem:[%s1465_s4] ss:$0 sm:$0xff]  ;;  %v628_v13 = vsub.s32 0, %v1273_v47 }
  0xcc   :  { %v227_v16 = vmul.f32 0.00390625, %v189_v25  ;;  %v366_v35 = vsel %vm324_vm6, %v365_v44, %v361_v22  ;;  %v698_v22 = vsub.s32 2, %v1273_v47 }
  0xcd   :  { %v330_v34 = vrot.slane %v206_v41, %v1321_v6  ;;  %v325_v42 = vsel %vm324_vm6, %v323_v46, %v318_v63 }
  0xce   :  { %v171_v33 = vpop.xlane.xlu1 %170  ;;  %v433_v11 = vrot.slane %v227_v16, %v1294_v57  ;;  %v429_v57 = vsel %vm303_vm3, %v428_v52, %v424_v38 }
  0xcf   :  { %v150_v23 = vpop.xlane.xlu0 %149  ;;  %v221_v50 = vmul.f32 0.00390625, %v171_v33 }
  0xd0   :  { %v214_v7 = vmul.f32 0.00390625, %v150_v23 }
  0xd1   :  { %v404_v25 = vrot.slane %v221_v50, %v1302_v55  ;;  %v332_v50 = vsel %vm331_vm7, %v330_v34, %v325_v42 }
  0xd2   :  { %v174_v3 = vpop.xlane.xlu1 %173  ;;  %v370_v5 = vrot.slane %v214_v7, %v1321_v6 }
  0xd3   :  { %v222_v43 = vmul.f32 0.00390625, %v174_v3  ;;  %v192_v24 = vpop.xlane.xlu0 %191  ;;  %v405_v53 = vsel %vm324_vm6, %v404_v25, %v400_v51  ;;  %v911_v3 = vld [vmem:[%s1463_s2] ss:$0 sm:$0xff]  ;;  %s1011_s2 = smov [#allocation6]  }
  0xd4   :  { %v228_v31 = vmul.f32 0.00390625, %v192_v24  ;;  %v371_v18 = vsel %vm331_vm7, %v370_v5, %v366_v35  ;;  %s899_s4 = sshll.u32 %s1011_s2, 4  ;;  %s900_s4 = int_to_ptr.vmem [resolvable:$true] %s899_s4 }
  0xd5   :  { %v409_v32 = vrot.slane %v222_v43, %v1321_v6  ;;  %v451_v19 = vsel %vm450_vm8, %v371_v18, %v332_v50  ;;  %s982_s5 = scalar_lea.vmem %s900_s4, 8192  ;;  %p987_p6 = scmp.lt.s32.totalorder %s900_s4, %s900_s4 }
  0xd6   :  { %v198_v40 = vpop.xlane.xlu1 %197  ;;  %v438_v33 = vrot.slane %v228_v31, %v1299_v62  ;;  %v434_v62 = vsel %vm310_vm4, %v433_v11, %v429_v57  ;;  %p983_p5 = scmp.ne.s32.totalorder %s900_s4, %s982_s5  ;;  %p988_p7 = scmp.lt.s32.totalorder %s982_s5, %s982_s5 }
  0xd7   :  { %v195_v20 = vpop.xlane.xlu0 %194  ;;  %v230_v58 = vmul.f32 0.00390625, %v198_v40  ;;  %v410_v21 = vsel %vm331_vm7, %v409_v32, %v405_v53  ;;  %v663_v32 = vsub.s32 1, %v1273_v47 }
  0xd8   :  { %v229_v23 = vmul.f32 0.00390625, %v195_v20  ;;  %v439_v7 = vsel %vm317_vm5, %v438_v33, %v434_v62  ;;  %v453_v17 = vsel %vm452_vm9, %v410_v21, %v451_v19  ;;  %v733_v33 = vsub.s32 3, %v1273_v47  ;;  %v1558_v19 = vld [vmem:[#allocation11_spill] sm:$0xff]  ;;  %p989_p8 = por %p988_p7, %p987_p6 }
  0xd9   :  { %v448_v30 = vrot.slane %v230_v58, %v1321_v6 }
  0xda   :  { %v443_v10 = vrot.slane %v229_v23, %v1302_v55  ;;  %v534_v55 = vld [vmem:[%s1464_s3] sm:$0xf]  ;;  %p990_p9 = pnand %p989_p8, %p983_p5 }
  0xdb   :  { %948 = vmatpush3.msk.msra.mxu1 %vm546_vm12, %v534_v55  ;;  %v1561_v55 = vld [vmem:[#allocation26_spill] sm:$0xff] }
  0xdc   :  { %v444_v59 = vsel %vm324_vm6, %v443_v10, %v439_v7 }
  0xdd   :  { %v449_v6 = vsel %vm331_vm7, %v448_v30, %v444_v59 }
  0xde   :  { %v455_v16 = vsel %vm454_vm10, %v449_v6, %v453_v17  ;;  %v1560_v17 = vld [vmem:[#allocation10_spill] sm:$0xff] }
  0xdf   :  { %945 = vmatmul.mubr.msk.f32.vlgmr.msra.gmra.mxu0 %vm456_vm11, %v455_v16 }
 0x19f   :  { %v525_v39 = vpop.f32.mrf.mxu0 }
 0x1a0   :  { %v526_v41 = vadd.f32 %v911_v3, %v525_v39  ;;  %v1562_v39 = vld [vmem:[#allocation27_spill] sm:$0xff] }
 0x1a1   :  { %v946_v43 = vpop.f32.mrf.mxu0 }
 0x1a2   :  { %vm530_vm13 = vcmp.gt.f32.partialorder %v526_v41, 0.0  ;;  %v532_v24 = vmul.f32 %v531_v54, %v526_v41  ;;  %v1563_v54 = vld [vmem:[#allocation16_spill] sm:$0xff]  ;;  %v1564_v43 = vld [vmem:[#allocation17_spill] sm:$0xff] }
 0x1a4   :  { %v533_v56 = vsel %vm530_vm13, %v526_v41, %v532_v24 }
 0x1a5   :  { %950 = vmatmul.mubr.msk.f32.vlgmr.msra.gmra.mxu1 %vm542_vm14, %v533_v56  ;;  %v1565_v56 = vld [vmem:[#allocation38_spill] sm:$0xff] }
 0x265   :  { %v616_v44 = vpop.f32.mrf.mxu1 }
 0x266   :  { %v617_v31 = vadd.f32 %v913_v45, %v616_v44  ;;  %v1566_v44 = vld [vmem:[#allocation39_spill] sm:$0xff] }
 0x267   :  { %v951_v63 = vpop.f32.mrf.mxu1 }
 0x268   :  { %v916_v52 = vmul.f32 -1.442695, %v617_v31 }
 0x26a   :  { %958 = vpow2.f32 %v916_v52 }
 0x277   :  { %v959_v25 = vpop.eup %958 }
 0x278   :  { %v623_v5 = vadd.f32 1.0, %v959_v25  ;;  %v1567_v25 = vld [vmem:[#allocation32_spill] sm:$0xff] }
 0x27a   :  { %960 = vrcp.f32 %v623_v5 }
 0x287   :  { %v961_v46 = vpop.eup %960 }
 0x288   :  { %v629_v11 = vrot.slane %v961_v46, %v628_v13  ;;  %v664_v40 = vrot.slane %v961_v46, %v663_v32  ;;  %v699_v34 = vrot.slane %v961_v46, %v698_v22  ;;  %v734_v20 = vrot.slane %v961_v46, %v733_v33  ;;  %v1568_v13 = vld [vmem:[#allocation33_spill] sm:$0xff] }
 0x28a   :  { %635 = vbcast.lane.b32.xlu1 %v629_v11, 264  ;;  %631 = vbcast.lane.b32.xlu0 %v629_v11, 256 }
 0x28e   :  { %639 = vbcast.lane.b32.xlu1 %v629_v11, 272  ;;  %647 = vbcast.lane.b32.xlu0 %v629_v11, 288 }
 0x292   :  { %643 = vbcast.lane.b32.xlu1 %v629_v11, 280  ;;  %655 = vbcast.lane.b32.xlu0 %v629_v11, 304 }
 0x296   :  { %651 = vbcast.lane.b32.xlu1 %v629_v11, 296  ;;  %666 = vbcast.lane.b32.xlu0 %v664_v40, 256 }
 0x29a   :  { %659 = vbcast.lane.b32.xlu1 %v629_v11, 312  ;;  %674 = vbcast.lane.b32.xlu0 %v664_v40, 272  ;;  %v1569_v11 = vld [vmem:[#allocation14_spill] sm:$0xff] }
 0x29e   :  { %670 = vbcast.lane.b32.xlu1 %v664_v40, 264  ;;  %682 = vbcast.lane.b32.xlu0 %v664_v40, 288 }
 0x2a2   :  { %678 = vbcast.lane.b32.xlu1 %v664_v40, 280  ;;  %690 = vbcast.lane.b32.xlu0 %v664_v40, 304 }
 0x2a6   :  { %686 = vbcast.lane.b32.xlu1 %v664_v40, 296  ;;  %701 = vbcast.lane.b32.xlu0 %v699_v34, 256 }
 0x2aa   :  { %694 = vbcast.lane.b32.xlu1 %v664_v40, 312  ;;  %709 = vbcast.lane.b32.xlu0 %v699_v34, 272  ;;  %v1570_v40 = vld [vmem:[#allocation15_spill] sm:$0xff] }
 0x2ae   :  { %705 = vbcast.lane.b32.xlu1 %v699_v34, 264  ;;  %717 = vbcast.lane.b32.xlu0 %v699_v34, 288 }
 0x2b2   :  { %713 = vbcast.lane.b32.xlu1 %v699_v34, 280  ;;  %725 = vbcast.lane.b32.xlu0 %v699_v34, 304 }
 0x2b6   :  { %721 = vbcast.lane.b32.xlu1 %v699_v34, 296  ;;  %736 = vbcast.lane.b32.xlu0 %v734_v20, 256 }
 0x2ba   :  { %729 = vbcast.lane.b32.xlu1 %v699_v34, 312  ;;  %744 = vbcast.lane.b32.xlu0 %v734_v20, 272 }
 0x2be   :  { %740 = vbcast.lane.b32.xlu1 %v734_v20, 264  ;;  %752 = vbcast.lane.b32.xlu0 %v734_v20, 288 }
 0x2c2   :  { %748 = vbcast.lane.b32.xlu1 %v734_v20, 280  ;;  %760 = vbcast.lane.b32.xlu0 %v734_v20, 304 }
 0x2c6   :  { %756 = vbcast.lane.b32.xlu1 %v734_v20, 296 }
 0x2ca   :  { %764 = vbcast.lane.b32.xlu1 %v734_v20, 312  ;;  %v1571_v20 = vld [vmem:[#allocation44_spill] sm:$0xff] }
 0x2fc   :  { %v636_v58 = vpop.permute.xlu1 %635  ;;  %v632_v38 = vpop.permute.xlu0 %631 }
 0x2fd   :  { %v768_v51 = vmul.f32 %v636_v58, %v1069_v8  ;;  %v769_v35 = vmul.f32 %v636_v58, %v1071_v9  ;;  %v766_v47 = vmul.f32 %v632_v38, %v1057_v2  ;;  %v767_v23 = vmul.f32 %v632_v38, %v1061_v4  ;;  %v1572_v38 = vld [vmem:[#allocation45_spill] sm:$0xff] }
 0x2ff   :  { %832 = vst [vmem:[#allocation6 + $0x10] sm:$0xff] %v768_v51  ;;  %833 = vst [vmem:[#allocation6 + $0x18] sm:$0xff] %v769_v35  ;;  %v1573_v35 = vld [vmem:[#allocation20_spill] sm:$0xff] }
 0x300   :  { %830 = vst [vmem:[#allocation6] sm:$0xff] %v766_v47  ;;  %831 = vst [vmem:[#allocation6 + $0x8] sm:$0xff] %v767_v23  ;;  %v640_v57 = vpop.permute.xlu1 %639  ;;  %v648_v53 = vpop.permute.xlu0 %647  ;;  %v1574_v23 = vld [vmem:[#allocation21_spill] sm:$0xff] }
 0x301   :  { %v770_v18 = vmul.f32 %v640_v57, %v1081_v14  ;;  %v771_v30 = vmul.f32 %v640_v57, %v1083_v15  ;;  %v774_v42 = vmul.f32 %v648_v53, %v1125_v36  ;;  %v775_v8 = vmul.f32 %v648_v53, %v1127_v37 }
 0x303   :  { %834 = vst [vmem:[#allocation6 + $0x20] sm:$0xff] %v770_v18  ;;  %835 = vst [vmem:[#allocation6 + $0x28] sm:$0xff] %v771_v30  ;;  %v1575_v30 = vld [vmem:[#allocation12_spill] sm:$0xff] }
 0x304   :  { %838 = vst [vmem:[#allocation6 + $0x40] sm:$0xff] %v774_v42  ;;  %839 = vst [vmem:[#allocation6 + $0x48] sm:$0xff] %v775_v8  ;;  %v644_v2 = vpop.permute.xlu1 %643  ;;  %v656_v4 = vpop.permute.xlu0 %655  ;;  %v1576_v8 = vld [vmem:[#allocation13_spill] sm:$0xff] }
 0x305   :  { %v772_v9 = vmul.f32 %v644_v2, %v1105_v26  ;;  %v773_v62 = vmul.f32 %v644_v2, %v1107_v27  ;;  %v778_v21 = vmul.f32 %v656_v4, %v1173_v60  ;;  %v779_v14 = vmul.f32 %v656_v4, %v1175_v61  ;;  %v1577_v4 = vld [vmem:[#allocation30_spill] sm:$0xff] }
 0x307   :  { %836 = vst [vmem:[#allocation6 + $0x30] sm:$0xff] %v772_v9  ;;  %837 = vst [vmem:[#allocation6 + $0x38] sm:$0xff] %v773_v62  ;;  %v1578_v62 = vld [vmem:[#allocation31_spill] sm:$0xff] }
 0x308   :  { %842 = vst [vmem:[#allocation6 + $0x60] sm:$0xff] %v778_v21  ;;  %843 = vst [vmem:[#allocation6 + $0x68] sm:$0xff] %v779_v14  ;;  %v652_v15 = vpop.permute.xlu1 %651  ;;  %v667_v36 = vpop.permute.xlu0 %666 }
 0x309   :  { %v776_v37 = vmul.f32 %v652_v15, %v1149_v48  ;;  %v777_v10 = vmul.f32 %v652_v15, %v1151_v49  ;;  %v782_v50 = vmul.f32 %v667_v36, %v1053_v0  ;;  %v783_v26 = vmul.f32 %v667_v36, %v1055_v1  ;;  %v1559_v49 = vld [vmem:[#allocation9_spill] sm:$0xff]  ;;  %v1579_v36 = vld [vmem:[#allocation24_spill] sm:$0xff] }
 0x30b   :  { %840 = vst [vmem:[#allocation6 + $0x50] sm:$0xff] %v776_v37  ;;  %841 = vst [vmem:[#allocation6 + $0x58] sm:$0xff] %v777_v10  ;;  %v1580_v10 = vld [vmem:[#allocation25_spill] sm:$0xff] }
 0x30c   :  { %846 = vst [vmem:[#allocation6 + $0x80] sm:$0xff] %v782_v50  ;;  %847 = vst [vmem:[#allocation6 + $0x88] sm:$0xff] %v783_v26  ;;  %v660_v27 = vpop.permute.xlu1 %659  ;;  %v675_v60 = vpop.permute.xlu0 %674  ;;  %v1581_v26 = vld [vmem:[#allocation42_spill] sm:$0xff] }
 0x30d   :  { %v780_v61 = vmul.f32 %v660_v27, %v1197_v28  ;;  %v781_v7 = vmul.f32 %v660_v27, %v1199_v29  ;;  %v786_v59 = vmul.f32 %v675_v60, %v1077_v12  ;;  %v787_v48 = vmul.f32 %v675_v60, %v1558_v19  ;;  %v1582_v60 = vld [vmem:[#allocation43_spill] sm:$0xff]  ;;  %v1583_v19 = vld [vmem:[#allocation36_spill] sm:$0xff] }
 0x30f   :  { %844 = vst [vmem:[#allocation6 + $0x70] sm:$0xff] %v780_v61  ;;  %845 = vst [vmem:[#allocation6 + $0x78] sm:$0xff] %v781_v7 }
 0x310   :  { %850 = vst [vmem:[#allocation6 + $0xa0] sm:$0xff] %v786_v59  ;;  %851 = vst [vmem:[#allocation6 + $0xa8] sm:$0xff] %v787_v48  ;;  %v671_v0 = vpop.permute.xlu1 %670  ;;  %v683_v1 = vpop.permute.xlu0 %682 }
 0x311   :  { %v784_v6 = vmul.f32 %v671_v0, %v1559_v49  ;;  %v785_v16 = vmul.f32 %v671_v0, %v1560_v17  ;;  %v790_v3 = vmul.f32 %v683_v1, %v1561_v55  ;;  %v791_v28 = vmul.f32 %v683_v1, %v1562_v39  ;;  %v1584_v0 = vld [vmem:[#allocation37_spill] sm:$0xff]  ;;  %v1585_v49 = vld [vmem:[#allocation18_spill] sm:$0xff]  ;;  %v1586_v17 = vld [vmem:[#allocation19_spill] sm:$0xff] }
 0x312   :  { %v1587_v39 = vld [vmem:[#allocation46_spill] sm:$0xff] }
 0x313   :  { %848 = vst [vmem:[#allocation6 + $0x90] sm:$0xff] %v784_v6  ;;  %849 = vst [vmem:[#allocation6 + $0x98] sm:$0xff] %v785_v16 }
 0x314   :  { %854 = vst [vmem:[#allocation6 + $0xc0] sm:$0xff] %v790_v3  ;;  %855 = vst [vmem:[#allocation6 + $0xc8] sm:$0xff] %v791_v28  ;;  %v679_v12 = vpop.permute.xlu1 %678  ;;  %v691_v29 = vpop.permute.xlu0 %690 }
 0x315   :  { %v788_v41 = vmul.f32 %v679_v12, %v1563_v54  ;;  %v789_v24 = vmul.f32 %v679_v12, %v1564_v43  ;;  %v794_v45 = vmul.f32 %v691_v29, %v1565_v56  ;;  %v795_v31 = vmul.f32 %v691_v29, %v1566_v44  ;;  %v1588_v12 = vld [vmem:[#allocation47_spill] sm:$0xff]  ;;  %v1589_v54 = vld [vmem:[#allocation28_spill] sm:$0xff]  ;;  %v1590_v43 = vld [vmem:[#allocation29_spill] sm:$0xff] }
 0x316   :  { %v1591_v44 = vld [vmem:[#allocation22_spill] sm:$0xff] }
 0x317   :  { %852 = vst [vmem:[#allocation6 + $0xb0] sm:$0xff] %v788_v41  ;;  %853 = vst [vmem:[#allocation6 + $0xb8] sm:$0xff] %v789_v24 }
 0x318   :  { %858 = vst [vmem:[#allocation6 + $0xe0] sm:$0xff] %v794_v45  ;;  %859 = vst [vmem:[#allocation6 + $0xe8] sm:$0xff] %v795_v31  ;;  %v687_v63 = vpop.permute.xlu1 %686  ;;  %v702_v52 = vpop.permute.xlu0 %701 }
 0x319   :  { %v792_v5 = vmul.f32 %v687_v63, %v1567_v25  ;;  %v793_v46 = vmul.f32 %v687_v63, %v1568_v13  ;;  %v798_v32 = vmul.f32 %v702_v52, %v1569_v11  ;;  %v799_v22 = vmul.f32 %v702_v52, %v1570_v40  ;;  %v1592_v63 = vld [vmem:[#allocation23_spill] sm:$0xff]  ;;  %v1593_v25 = vld [vmem:[#allocation40_spill] sm:$0xff]  ;;  %v1594_v13 = vld [vmem:[#allocation41_spill] sm:$0xff] }
 0x31a   :  { %v1595_v40 = vld [vmem:[#allocation34_spill] sm:$0xff] }
 0x31b   :  { %856 = vst [vmem:[#allocation6 + $0xd0] sm:$0xff] %v792_v5  ;;  %857 = vst [vmem:[#allocation6 + $0xd8] sm:$0xff] %v793_v46 }
 0x31c   :  { %862 = vst [vmem:[#allocation6 + $0x100] sm:$0xff] %v798_v32  ;;  %863 = vst [vmem:[#allocation6 + $0x108] sm:$0xff] %v799_v22  ;;  %v695_v34 = vpop.permute.xlu1 %694  ;;  %v710_v33 = vpop.permute.xlu0 %709 }
 0x31d   :  { %v796_v58 = vmul.f32 %v695_v34, %v1571_v20  ;;  %v797_v51 = vmul.f32 %v695_v34, %v1572_v38  ;;  %v802_v47 = vmul.f32 %v710_v33, %v1573_v35  ;;  %v803_v57 = vmul.f32 %v710_v33, %v1574_v23  ;;  %v1596_v34 = vld [vmem:[#allocation35_spill] sm:$0xff]  ;;  %v1597_v20 = vld [vmem:[#allocation52_spill] sm:$0xff]  ;;  %v1598_v38 = vld [vmem:[#allocation53_spill] sm:$0xff] }
 0x31f   :  { %860 = vst [vmem:[#allocation6 + $0xf0] sm:$0xff] %v796_v58  ;;  %861 = vst [vmem:[#allocation6 + $0xf8] sm:$0xff] %v797_v51 }
 0x320   :  { %866 = vst [vmem:[#allocation6 + $0x120] sm:$0xff] %v802_v47  ;;  %867 = vst [vmem:[#allocation6 + $0x128] sm:$0xff] %v803_v57  ;;  %v706_v53 = vpop.permute.xlu1 %705  ;;  %v718_v18 = vpop.permute.xlu0 %717  ;;  %v1599_v47 = vld [vmem:[#allocation48_spill] sm:$0xff]  ;;  %v1600_v57 = vld [vmem:[#allocation49_spill] sm:$0xff] }
 0x321   :  { %v800_v42 = vmul.f32 %v706_v53, %v1575_v30  ;;  %v801_v2 = vmul.f32 %v706_v53, %v1576_v8  ;;  %v806_v9 = vmul.f32 %v718_v18, %v1577_v4  ;;  %v807_v21 = vmul.f32 %v718_v18, %v1578_v62  ;;  %v1601_v30 = vld [vmem:[#allocation50_spill] sm:$0xff]  ;;  %v1602_v8 = vld [vmem:[#allocation51_spill] sm:$0xff] }
 0x323   :  { %864 = vst [vmem:[#allocation6 + $0x110] sm:$0xff] %v800_v42  ;;  %865 = vst [vmem:[#allocation6 + $0x118] sm:$0xff] %v801_v2 }
 0x324   :  { %870 = vst [vmem:[#allocation6 + $0x140] sm:$0xff] %v806_v9  ;;  %871 = vst [vmem:[#allocation6 + $0x148] sm:$0xff] %v807_v21  ;;  %v714_v14 = vpop.permute.xlu1 %713  ;;  %v726_v15 = vpop.permute.xlu0 %725 }
 0x325   :  { %v804_v37 = vmul.f32 %v714_v14, %v1579_v36  ;;  %v805_v50 = vmul.f32 %v714_v14, %v1580_v10  ;;  %v810_v27 = vmul.f32 %v726_v15, %v1581_v26  ;;  %v811_v61 = vmul.f32 %v726_v15, %v1582_v60 }
 0x327   :  { %868 = vst [vmem:[#allocation6 + $0x130] sm:$0xff] %v804_v37  ;;  %869 = vst [vmem:[#allocation6 + $0x138] sm:$0xff] %v805_v50 }
 0x328   :  { %874 = vst [vmem:[#allocation6 + $0x160] sm:$0xff] %v810_v27  ;;  %875 = vst [vmem:[#allocation6 + $0x168] sm:$0xff] %v811_v61  ;;  %v722_v7 = vpop.permute.xlu1 %721  ;;  %v737_v59 = vpop.permute.xlu0 %736 }
 0x329   :  { %v808_v48 = vmul.f32 %v722_v7, %v1583_v19  ;;  %v809_v1 = vmul.f32 %v722_v7, %v1584_v0  ;;  %v814_v6 = vmul.f32 %v737_v59, %v1585_v49  ;;  %v815_v16 = vmul.f32 %v737_v59, %v1586_v17 }
 0x32b   :  { %872 = vst [vmem:[#allocation6 + $0x150] sm:$0xff] %v808_v48  ;;  %873 = vst [vmem:[#allocation6 + $0x158] sm:$0xff] %v809_v1 }
 0x32c   :  { %878 = vst [vmem:[#allocation6 + $0x180] sm:$0xff] %v814_v6  ;;  %879 = vst [vmem:[#allocation6 + $0x188] sm:$0xff] %v815_v16  ;;  %v730_v55 = vpop.permute.xlu1 %729  ;;  %v745_v3 = vpop.permute.xlu0 %744 }
 0x32d   :  { %v812_v28 = vmul.f32 %v730_v55, %v1587_v39  ;;  %v813_v29 = vmul.f32 %v730_v55, %v1588_v12  ;;  %v818_v41 = vmul.f32 %v745_v3, %v1589_v54  ;;  %v819_v24 = vmul.f32 %v745_v3, %v1590_v43 }
 0x32f   :  { %876 = vst [vmem:[#allocation6 + $0x170] sm:$0xff] %v812_v28  ;;  %877 = vst [vmem:[#allocation6 + $0x178] sm:$0xff] %v813_v29 }
 0x330   :  { %882 = vst [vmem:[#allocation6 + $0x1a0] sm:$0xff] %v818_v41  ;;  %883 = vst [vmem:[#allocation6 + $0x1a8] sm:$0xff] %v819_v24  ;;  %v741_v56 = vpop.permute.xlu1 %740  ;;  %v753_v45 = vpop.permute.xlu0 %752 }
 0x331   :  { %v816_v31 = vmul.f32 %v741_v56, %v1591_v44  ;;  %v817_v52 = vmul.f32 %v741_v56, %v1592_v63  ;;  %v822_v5 = vmul.f32 %v753_v45, %v1593_v25  ;;  %v823_v46 = vmul.f32 %v753_v45, %v1594_v13 }
 0x333   :  { %880 = vst [vmem:[#allocation6 + $0x190] sm:$0xff] %v816_v31  ;;  %881 = vst [vmem:[#allocation6 + $0x198] sm:$0xff] %v817_v52 }
 0x334   :  { %886 = vst [vmem:[#allocation6 + $0x1c0] sm:$0xff] %v822_v5  ;;  %887 = vst [vmem:[#allocation6 + $0x1c8] sm:$0xff] %v823_v46  ;;  %v749_v11 = vpop.permute.xlu1 %748  ;;  %v761_v32 = vpop.permute.xlu0 %760 }
 0x335   :  { %v820_v22 = vmul.f32 %v749_v11, %v1595_v40  ;;  %v821_v33 = vmul.f32 %v749_v11, %v1596_v34  ;;  %v826_v58 = vmul.f32 %v761_v32, %v1597_v20  ;;  %v827_v51 = vmul.f32 %v761_v32, %v1598_v38 }
 0x337   :  { %884 = vst [vmem:[#allocation6 + $0x1b0] sm:$0xff] %v820_v22  ;;  %885 = vst [vmem:[#allocation6 + $0x1b8] sm:$0xff] %v821_v33 }
 0x338   :  { %890 = vst [vmem:[#allocation6 + $0x1e0] sm:$0xff] %v826_v58  ;;  %891 = vst [vmem:[#allocation6 + $0x1e8] sm:$0xff] %v827_v51  ;;  %v757_v35 = vpop.permute.xlu1 %756 }
 0x339   :  { %v824_v23 = vmul.f32 %v757_v35, %v1599_v47  ;;  %v825_v53 = vmul.f32 %v757_v35, %v1600_v57 }
 0x33b   :  { %888 = vst [vmem:[#allocation6 + $0x1d0] sm:$0xff] %v824_v23  ;;  %889 = vst [vmem:[#allocation6 + $0x1d8] sm:$0xff] %v825_v53 }
 0x33c   :  { %v765_v18 = vpop.permute.xlu1 %764 }
 0x33d   :  { %v828_v42 = vmul.f32 %v765_v18, %v1601_v30  ;;  %v829_v2 = vmul.f32 %v765_v18, %v1602_v8 }
 0x33f   :  { %892 = vst [vmem:[#allocation6 + $0x1f0] sm:$0xff] %v828_v42  ;;  %893 = vst [vmem:[#allocation6 + $0x1f8] sm:$0xff] %v829_v2 }
 0x340   :  { %993 = shalt.err (!%p990_p9)
}
 0x341   :  { %905 = dma.vmem_to_hbm [thread:$0]  %s900_s4, 8192, %s1467_s6, [#allocation5], %s1007_s24, %s1007_s24, %s1008_s25  }
 0x342   :  { %1004 = dma.done.wait [#allocation5], 8192  }
 0x343   :  { %1005 = vsyncadd [#allocation5], 4294959104 }
 0x344   :  { %909 = vsyncpa [#allocation4], 1 }
 0x345   :  { %910 = vsyncpa [#allocation5], 1 }

</bundles_post_ra>
